<compile_context>
chip_gen: v7x
topology: tpu7x:2x2x1
jax: 0.10.0
libtpu: 0.0.40
codegen_flags: <defaults>
</compile_context>

<pallas_src>
import math

import jax
import jax.numpy as jnp
from jax.experimental import pallas as pl
from jax.experimental.pallas import tpu as pltpu


_LANE = 128      # vreg lane width
_SUBLANE = 8     # vreg sublane count (f32)
_MAX_TM = 512    # largest batch tile we ever ask for


def _round_up(x, m):
    return ((x + m - 1) // m) * m


def _apply_activation(y, activation):
    act = activation.lower()
    if act == "linear":
        return y
    if act == "tanh":
        return jnp.tanh(y)
    if act == "relu":
        return jnp.maximum(y, 0.0)
    if act == "sigmoid":
        return jax.nn.sigmoid(y)
    # TODO(synk): other torch.* activations can be added here as needed.
    raise NotImplementedError(f"activation '{activation}' not supported")


def _physical_vmem_bytes():
    """Per-core VMEM capacity; conservative fallback if the query fails."""
    try:
        return int(pltpu.get_tpu_info().vmem_capacity_bytes)
    except Exception:
        return 64 * 1024 * 1024  # v7x per-TC size (most restrictive case)


# ----------------------------------------------------------------------------
# Fused kernel: chain of (bf16 matmul + optional f32 bias + f32 activation).
# ----------------------------------------------------------------------------
def _make_fused_mlp_kernel(layer_meta):
    """layer_meta: tuple of (has_bias: bool, activation: str), one per layer."""

    def kernel(*refs):
        # refs layout: x_ref, then per layer [w_ref, (b_ref if has_bias)], o_ref
        x_ref = refs[0]
        o_ref = refs[-1]
        h = x_ref[...]                       # f32 activations
        idx = 1
        for has_bias, activation in layer_meta:
            w_ref = refs[idx]
            idx += 1
            # bf16 operands into the MXU, f32 accumulation. Intermediate `h`
            # stays in VMEM/vregs across the whole chain (no HBM round-trip).
            y = jnp.dot(
                h.astype(jnp.bfloat16),
                w_ref[...],
                preferred_element_type=jnp.float32,
            )
            if has_bias:
                b_ref = refs[idx]
                idx += 1
                y = y + b_ref[...]           # (1, D_out) f32 broadcast
            h = _apply_activation(y, activation)
        o_ref[...] = h.astype(o_ref.dtype)

    return kernel


def fused_mlp(x, weights, biases, layer_meta, out_dim):
    """Run the whole MLP as ONE pallas_call.

    x          : [B, D_in] f32 (unpadded)
    weights[l] : zero-padded bf16 [Dp_in_l, Dp_out_l] (lane-aligned to 128)
    biases[l]  : zero-padded f32 [1, Dp_out_l], or None when the layer has no bias
    """
    B, D_in = x.shape
    Dp0 = weights[0].shape[0]
    Dp_last = weights[-1].shape[1]
    max_Dp = max(max(w.shape[0] for w in weights), max(w.shape[1] for w in weights))

    # Resident (single-buffered) parameter footprint.
    weight_bytes = sum(int(w.size) * w.dtype.itemsize for w in weights)
    weight_bytes += sum(int(b.size) * b.dtype.itemsize for b in biases if b is not None)

    # Per-batch-row VMEM cost: double-buffered x/out tiles + a generous slab for
    # the f32/bf16 intermediate activations the compiler keeps live.
    per_row_bytes = 4 * 2 * Dp0 + 4 * 2 * Dp_last + 12 * max_Dp

    phys_vmem = _physical_vmem_bytes()
    vmem_cap = int(phys_vmem * 0.85)          # headroom for Mosaic internals

    # --- batch-tile choice (generation aware) --------------------------------
    tm_cap = max(_SUBLANE, (vmem_cap - weight_bytes) // max(per_row_bytes, 1))
    tm_cap = max(_SUBLANE, (tm_cap // _SUBLANE) * _SUBLANE)
    if B <= _SUBLANE:
        tm = _round_up(max(B, 1), _SUBLANE)   # tiny batch: single sublane tile
    else:
        # Prefer >=2 tiles so both v7x TensorCores get work; let tiles grow up
        # to 512 rows (helps v5e/v6e amortise per-step overhead) within VMEM.
        two_tile = _round_up(pl.cdiv(B, 2), _SUBLANE)
        tm = min(two_tile, _MAX_TM, tm_cap)
        tm = max(_SUBLANE, (tm // _SUBLANE) * _SUBLANE)

    Bp = _round_up(B, tm)
    grid = (Bp // tm,)

    # Skip the XLA-side pad (an extra HBM read+write of activations) when the
    # input is already tile/lane aligned.
    if Bp == B and Dp0 == D_in:
        xp = x
    else:
        xp = jnp.zeros((Bp, Dp0), dtype=x.dtype).at[:B, :D_in].set(x)

    # Computed VMEM budget, clamped to the chip's physical capacity. Slightly
    # over-provisioned (2x weights) so the no-Buffered fallback also fits.
    vmem_need = 2 * weight_bytes + tm * per_row_bytes + (4 << 20)
    vmem_limit = max(32 << 20, min(vmem_cap, vmem_need))

    out_specs = pl.BlockSpec((tm, Dp_last), lambda i: (i, 0))
    out_shape = jax.ShapeDtypeStruct((Bp, Dp_last), jnp.float32)

    # Cost estimate so XLA schedules the custom call sensibly in larger graphs.
    flops = 0
    transcendentals = 0
    bytes_accessed = int(xp.size) * 4 + Bp * Dp_last * 4
    for (has_bias, act), w, b in zip(layer_meta, weights, biases):
        flops += 2 * Bp * w.shape[0] * w.shape[1]
        if act.lower() in ("tanh", "sigmoid"):
            transcendentals += Bp * w.shape[1]
        bytes_accessed += int(w.size) * w.dtype.itemsize
        if has_bias:
            bytes_accessed += int(b.size) * b.dtype.itemsize
    cost = pl.CostEstimate(
        flops=flops, transcendentals=transcendentals, bytes_accessed=bytes_accessed
    )

    kernel = _make_fused_mlp_kernel(layer_meta)

    def _run(single_buffer_resident):
        inputs = [xp]
        in_specs = [pl.BlockSpec((tm, Dp0), lambda i: (i, 0))]
        # Weights/biases use a constant index_map -> resident across batch
        # tiles; single-buffer them (double-buffering a never-changing block
        # is pure VMEM waste, which matters most on v7x's 64 MiB).
        resident_kw = (
            dict(pipeline_mode=pl.Buffered(1)) if single_buffer_resident else {}
        )
        for (has_bias, _), w, b in zip(layer_meta, weights, biases):
            inputs.append(w)
            in_specs.append(pl.BlockSpec(w.shape, lambda i: (0, 0), **resident_kw))
            if has_bias:
                inputs.append(b)
                in_specs.append(pl.BlockSpec(b.shape, lambda i: (0, 0), **resident_kw))
        return pl.pallas_call(
            kernel,
            out_shape=out_shape,
            grid=grid,
            in_specs=in_specs,
            out_specs=out_specs,
            compiler_params=pltpu.CompilerParams(
                # Batch tiles are independent -> shard across TensorCores (v7x).
                dimension_semantics=("parallel",),
                vmem_limit_bytes=int(vmem_limit),
            ),
            cost_estimate=cost,
            # TODO(synk): for layers whose single-buffered weight does not fit
            # VMEM (e.g. 4k x 4k on v7x), add a K-reduction "arbitrary" grid
            # axis with a pl.when-initialized f32 accumulator, or keep weights
            # in memory_space=pl.ANY and stream K/N tiles with make_async_copy
            # double-buffering (also enables layer-l+1 weight prefetch overlap
            # and an fp8 weight path on v7x).
        )(*inputs)

    try:
        yp = _run(single_buffer_resident=True)
    except Exception:
        # Some JAX versions reject Buffered(1); identical semantics, just
        # default double-buffering for the resident parameter blocks.
        yp = _run(single_buffer_resident=False)

    # Slice away batch/lane padding only if any was added.
    if Bp == B and Dp_last == out_dim:
        return yp
    return yp[:B, :out_dim]


# ----------------------------------------------------------------------------
# MLP: mirrors the PyTorch module semantics
# ----------------------------------------------------------------------------
class MLP:
    def __init__(self, inputSpaceDim, outputSpaceDim, archSpecs, key):
        layerSizes = [inputSpaceDim] + archSpecs["layerSizes"] + [outputSpaceDim]
        useBias = archSpecs["useBias"]
        self.activationFunctions = list(archSpecs["activationFunctions"])
        if len(self.activationFunctions) == len(layerSizes) - 2:
            self.activationFunctions.append("linear")
        assert len(self.activationFunctions) == len(layerSizes) - 1

        self.outputSpaceDim = outputSpaceDim
        self.params = []          # unpadded f32 (W, b_or_None) for the reference
        self.padded_weights = []  # lane-padded bf16 weights (zero-filled)
        self.padded_biases = []   # lane-padded f32 biases (None when no bias)
        layer_meta = []

        for l in range(len(layerSizes) - 1):
            d_in, d_out = layerSizes[l], layerSizes[l + 1]
            # Matches PyTorch: bias=useBias for hidden layers, always True for
            # the final layer (nn.Linear(..., bias=useBias if l < L-1 else True)).
            has_bias = bool(useBias) if l < len(layerSizes) - 2 else True
            key, wk, bk = jax.random.split(key, 3)
            # PyTorch nn.Linear default init: U(-1/sqrt(fan_in), 1/sqrt(fan_in))
            bound = 1.0 / math.sqrt(d_in)
            w = jax.random.uniform(
                wk, (d_in, d_out), dtype=jnp.float32, minval=-bound, maxval=bound
            )
            b = (
                jax.random.uniform(
                    bk, (1, d_out), dtype=jnp.float32, minval=-bound, maxval=bound
                )
                if has_bias
                else None
            )

            dp_in = _round_up(d_in, _LANE)
            dp_out = _round_up(d_out, _LANE)
            # Zero padding keeps the chained math exact: padded weight rows are
            # zero, so padded activation lanes (e.g. sigmoid(0)=0.5) never
            # contaminate later layers. Weights stored bf16 for the MXU.
            wp = (
                jnp.zeros((dp_in, dp_out), jnp.float32)
                .at[:d_in, :d_out]
                .set(w)
                .astype(jnp.bfloat16)
            )
            bp = (
                jnp.zeros((1, dp_out), jnp.float32).at[:, :d_out].set(b)
                if has_bias
                else None
            )

            self.params.append((w, b))
            self.padded_weights.append(wp)
            self.padded_biases.append(bp)
            layer_meta.append((has_bias, self.activationFunctions[l]))

        self.layer_meta = tuple(layer_meta)

    def __call__(self, x):
        return fused_mlp(
            x, self.padded_weights, self.padded_biases, self.layer_meta,
            self.outputSpaceDim,
        )


# Pure-JAX reference (same bf16-operand / f32-accumulate numerics as the kernel)
def mlp_ref(mlp, x):
    h = x
    for (w, b), (has_bias, act) in zip(mlp.params, mlp.layer_meta):
        y = jnp.dot(
            h.astype(jnp.bfloat16),
            w.astype(jnp.bfloat16),
            preferred_element_type=jnp.float32,
        )
        if has_bias:
            y = y + b
        h = _apply_activation(y, act)
    return h


if __name__ == "__main__":
    key = jax.random.PRNGKey(0)
    key, xkey, pkey = jax.random.split(key, 3)

    inputSpaceDim = 32
    outputSpaceDim = 16
    archSpecs = {
        "layerSizes": [64, 64],
        "useBias": True,
        "activationFunctions": ["tanh", "relu"],  # final 'linear' is appended
    }

    batch = 8
    x = jax.random.normal(xkey, (batch, inputSpaceDim), dtype=jnp.float32)

    mlp = MLP(inputSpaceDim, outputSpaceDim, archSpecs, pkey)

    out = mlp(x)
    out = jax.block_until_ready(out)

    ref = mlp_ref(mlp, x)
    assert out.shape == (batch, outputSpaceDim)
    assert jnp.allclose(out, ref, atol=5e-3, rtol=5e-3)

    print("KERNEL_OK")
</pallas_src>

<mosaic_0001>
module attributes {stable_mosaic.version = 11 : i64} {
  func.func @kernel(%arg0: i32, %arg1: memref<8x128xf32, #tpu.memory_space<vmem>>, %arg2: memref<128x128xbf16, #tpu.memory_space<vmem>>, %arg3: memref<1x128xf32, #tpu.memory_space<vmem>>, %arg4: memref<128x128xbf16, #tpu.memory_space<vmem>>, %arg5: memref<1x128xf32, #tpu.memory_space<vmem>>, %arg6: memref<128x128xbf16, #tpu.memory_space<vmem>>, %arg7: memref<1x128xf32, #tpu.memory_space<vmem>>, %arg8: memref<8x128xf32, #tpu.memory_space<vmem>>) attributes {dimension_semantics = [#tpu.dimension_semantics<parallel>], iteration_bounds = array<i64: 1>, scalar_prefetch = 0 : i64, scratch_operands = 0 : i64, tpu.core_type = #tpu.core_type<tc>, window_params = [{transform_indices = @transform_0, window_bounds = array<i64: 8, 128>}, {pipeline_mode = #tpu.pipeline_mode<synchronous>, transform_indices = @transform_1, window_bounds = array<i64: 128, 128>}, {pipeline_mode = #tpu.pipeline_mode<synchronous>, transform_indices = @transform_2, window_bounds = array<i64: 1, 128>}, {pipeline_mode = #tpu.pipeline_mode<synchronous>, transform_indices = @transform_3, window_bounds = array<i64: 128, 128>}, {pipeline_mode = #tpu.pipeline_mode<synchronous>, transform_indices = @transform_4, window_bounds = array<i64: 1, 128>}, {pipeline_mode = #tpu.pipeline_mode<synchronous>, transform_indices = @transform_5, window_bounds = array<i64: 128, 128>}, {pipeline_mode = #tpu.pipeline_mode<synchronous>, transform_indices = @transform_6, window_bounds = array<i64: 1, 128>}, {transform_indices = @transform_7, window_bounds = array<i64: 8, 128>}]} {
    %c0 = arith.constant 0 : index
    %c0_0 = arith.constant 0 : index
    %0 = vector.load %arg1[%c0, %c0_0] : memref<8x128xf32, #tpu.memory_space<vmem>>, vector<8x128xf32>
    %1 = arith.truncf %0 : vector<8x128xf32> to vector<8x128xbf16>
    %c0_1 = arith.constant 0 : index
    %c0_2 = arith.constant 0 : index
    %2 = vector.load %arg2[%c0_1, %c0_2] : memref<128x128xbf16, #tpu.memory_space<vmem>>, vector<128x128xbf16>
    %cst = arith.constant dense<0.000000e+00> : vector<8x128xf32>
    %3 = tpu.matmul %1, %2, %cst {dimension_numbers = #tpu.dot_dimension_numbers<[1], [0], [0], [1], [0, 0, 1, 1], [], []>} : vector<8x128xbf16>, vector<128x128xbf16>, vector<8x128xf32> -> vector<8x128xf32>
    %c0_3 = arith.constant 0 : index
    %c0_4 = arith.constant 0 : index
    %4 = vector.load %arg3[%c0_3, %c0_4] : memref<1x128xf32, #tpu.memory_space<vmem>>, vector<1x128xf32>
    %5 = vector.broadcast %4 : vector<1x128xf32> to vector<8x128xf32>
    %6 = arith.addf %3, %5 : vector<8x128xf32>
    %7 = math.tanh %6 : vector<8x128xf32>
    %8 = arith.truncf %7 : vector<8x128xf32> to vector<8x128xbf16>
    %c0_5 = arith.constant 0 : index
    %c0_6 = arith.constant 0 : index
    %9 = vector.load %arg4[%c0_5, %c0_6] : memref<128x128xbf16, #tpu.memory_space<vmem>>, vector<128x128xbf16>
    %cst_7 = arith.constant dense<0.000000e+00> : vector<8x128xf32>
    %10 = tpu.matmul %8, %9, %cst_7 {dimension_numbers = #tpu.dot_dimension_numbers<[1], [0], [0], [1], [0, 0, 1, 1], [], []>} : vector<8x128xbf16>, vector<128x128xbf16>, vector<8x128xf32> -> vector<8x128xf32>
    %c0_8 = arith.constant 0 : index
    %c0_9 = arith.constant 0 : index
    %11 = vector.load %arg5[%c0_8, %c0_9] : memref<1x128xf32, #tpu.memory_space<vmem>>, vector<1x128xf32>
    %12 = vector.broadcast %11 : vector<1x128xf32> to vector<8x128xf32>
    %13 = arith.addf %10, %12 : vector<8x128xf32>
    %cst_10 = arith.constant 0.000000e+00 : f32
    %14 = vector.broadcast %cst_10 : f32 to vector<8x128xf32>
    %15 = arith.maximumf %13, %14 : vector<8x128xf32>
    %16 = arith.truncf %15 : vector<8x128xf32> to vector<8x128xbf16>
    %c0_11 = arith.constant 0 : index
    %c0_12 = arith.constant 0 : index
    %17 = vector.load %arg6[%c0_11, %c0_12] : memref<128x128xbf16, #tpu.memory_space<vmem>>, vector<128x128xbf16>
    %cst_13 = arith.constant dense<0.000000e+00> : vector<8x128xf32>
    %18 = tpu.matmul %16, %17, %cst_13 {dimension_numbers = #tpu.dot_dimension_numbers<[1], [0], [0], [1], [0, 0, 1, 1], [], []>} : vector<8x128xbf16>, vector<128x128xbf16>, vector<8x128xf32> -> vector<8x128xf32>
    %c0_14 = arith.constant 0 : index
    %c0_15 = arith.constant 0 : index
    %19 = vector.load %arg7[%c0_14, %c0_15] : memref<1x128xf32, #tpu.memory_space<vmem>>, vector<1x128xf32>
    %20 = vector.broadcast %19 : vector<1x128xf32> to vector<8x128xf32>
    %21 = arith.addf %18, %20 : vector<8x128xf32>
    %c0_16 = arith.constant 0 : index
    %c0_17 = arith.constant 0 : index
    %22 = vector.load %arg8[%c0_16, %c0_17] : memref<8x128xf32, #tpu.memory_space<vmem>>, vector<8x128xf32>
    tpu.vector_store %arg8[%c0_16, %c0_17], %21 {strides = array<i32>} : memref<8x128xf32, #tpu.memory_space<vmem>>, vector<8x128xf32>,
    return
  }
  func.func @transform_0(%arg0: i32) -> (i32, i32) {
    %c0_i32 = arith.constant 0 : i32
    %c0_i32_0 = arith.constant 0 : i32
    return %arg0, %c0_i32 : i32, i32
  }
  func.func @transform_1(%arg0: i32) -> (i32, i32) {
    %c0_i32 = arith.constant 0 : i32
    %c0_i32_0 = arith.constant 0 : i32
    %c0_i32_1 = arith.constant 0 : i32
    return %c0_i32, %c0_i32_0 : i32, i32
  }
  func.func @transform_2(%arg0: i32) -> (i32, i32) {
    %c0_i32 = arith.constant 0 : i32
    %c0_i32_0 = arith.constant 0 : i32
    %c0_i32_1 = arith.constant 0 : i32
    return %c0_i32, %c0_i32_0 : i32, i32
  }
  func.func @transform_3(%arg0: i32) -> (i32, i32) {
    %c0_i32 = arith.constant 0 : i32
    %c0_i32_0 = arith.constant 0 : i32
    %c0_i32_1 = arith.constant 0 : i32
    return %c0_i32, %c0_i32_0 : i32, i32
  }
  func.func @transform_4(%arg0: i32) -> (i32, i32) {
    %c0_i32 = arith.constant 0 : i32
    %c0_i32_0 = arith.constant 0 : i32
    %c0_i32_1 = arith.constant 0 : i32
    return %c0_i32, %c0_i32_0 : i32, i32
  }
  func.func @transform_5(%arg0: i32) -> (i32, i32) {
    %c0_i32 = arith.constant 0 : i32
    %c0_i32_0 = arith.constant 0 : i32
    %c0_i32_1 = arith.constant 0 : i32
    return %c0_i32, %c0_i32_0 : i32, i32
  }
  func.func @transform_6(%arg0: i32) -> (i32, i32) {
    %c0_i32 = arith.constant 0 : i32
    %c0_i32_0 = arith.constant 0 : i32
    %c0_i32_1 = arith.constant 0 : i32
    return %c0_i32, %c0_i32_0 : i32, i32
  }
  func.func @transform_7(%arg0: i32) -> (i32, i32) {
    %c0_i32 = arith.constant 0 : i32
    %c0_i32_0 = arith.constant 0 : i32
    return %arg0, %c0_i32 : i32, i32
  }
}

module attributes {stable_mosaic.version = 11 : i64} {
  func.func @kernel(%arg0: i32, %arg1: memref<8x128xf32, #tpu.memory_space<vmem>>, %arg2: memref<128x128xbf16, #tpu.memory_space<vmem>>, %arg3: memref<1x128xf32, #tpu.memory_space<vmem>>, %arg4: memref<128x128xbf16, #tpu.memory_space<vmem>>, %arg5: memref<1x128xf32, #tpu.memory_space<vmem>>, %arg6: memref<128x128xbf16, #tpu.memory_space<vmem>>, %arg7: memref<1x128xf32, #tpu.memory_space<vmem>>, %arg8: memref<8x128xf32, #tpu.memory_space<vmem>>) attributes {dimension_semantics = [#tpu.dimension_semantics<parallel>], iteration_bounds = array<i64: 1>, scalar_prefetch = 0 : i64, scratch_operands = 0 : i64, tpu.core_type = #tpu.core_type<tc>, window_params = [{transform_indices = @transform_0, window_bounds = array<i64: 8, 128>}, {pipeline_mode = #tpu.pipeline_mode<synchronous>, transform_indices = @transform_1, window_bounds = array<i64: 128, 128>}, {pipeline_mode = #tpu.pipeline_mode<synchronous>, transform_indices = @transform_2, window_bounds = array<i64: 1, 128>}, {pipeline_mode = #tpu.pipeline_mode<synchronous>, transform_indices = @transform_3, window_bounds = array<i64: 128, 128>}, {pipeline_mode = #tpu.pipeline_mode<synchronous>, transform_indices = @transform_4, window_bounds = array<i64: 1, 128>}, {pipeline_mode = #tpu.pipeline_mode<synchronous>, transform_indices = @transform_5, window_bounds = array<i64: 128, 128>}, {pipeline_mode = #tpu.pipeline_mode<synchronous>, transform_indices = @transform_6, window_bounds = array<i64: 1, 128>}, {transform_indices = @transform_7, window_bounds = array<i64: 8, 128>}]} {
    %c0 = arith.constant 0 : index
    %c0_0 = arith.constant 0 : index
    %0 = vector.load %arg1[%c0, %c0_0] : memref<8x128xf32, #tpu.memory_space<vmem>>, vector<8x128xf32>
    %1 = arith.truncf %0 : vector<8x128xf32> to vector<8x128xbf16>
    %c0_1 = arith.constant 0 : index
    %c0_2 = arith.constant 0 : index
    %2 = vector.load %arg2[%c0_1, %c0_2] : memref<128x128xbf16, #tpu.memory_space<vmem>>, vector<128x128xbf16>
    %cst = arith.constant dense<0.000000e+00> : vector<8x128xf32>
    %3 = tpu.matmul %1, %2, %cst {dimension_numbers = #tpu.dot_dimension_numbers<[1], [0], [0], [1], [0, 0, 1, 1], [], []>} : vector<8x128xbf16>, vector<128x128xbf16>, vector<8x128xf32> -> vector<8x128xf32>
    %c0_3 = arith.constant 0 : index
    %c0_4 = arith.constant 0 : index
    %4 = vector.load %arg3[%c0_3, %c0_4] : memref<1x128xf32, #tpu.memory_space<vmem>>, vector<1x128xf32>
    %5 = vector.broadcast %4 : vector<1x128xf32> to vector<8x128xf32>
    %6 = arith.addf %3, %5 : vector<8x128xf32>
    %7 = math.tanh %6 : vector<8x128xf32>
    %8 = arith.truncf %7 : vector<8x128xf32> to vector<8x128xbf16>
    %c0_5 = arith.constant 0 : index
    %c0_6 = arith.constant 0 : index
    %9 = vector.load %arg4[%c0_5, %c0_6] : memref<128x128xbf16, #tpu.memory_space<vmem>>, vector<128x128xbf16>
    %cst_7 = arith.constant dense<0.000000e+00> : vector<8x128xf32>
    %10 = tpu.matmul %8, %9, %cst_7 {dimension_numbers = #tpu.dot_dimension_numbers<[1], [0], [0], [1], [0, 0, 1, 1], [], []>} : vector<8x128xbf16>, vector<128x128xbf16>, vector<8x128xf32> -> vector<8x128xf32>
    %c0_8 = arith.constant 0 : index
    %c0_9 = arith.constant 0 : index
    %11 = vector.load %arg5[%c0_8, %c0_9] : memref<1x128xf32, #tpu.memory_space<vmem>>, vector<1x128xf32>
    %12 = vector.broadcast %11 : vector<1x128xf32> to vector<8x128xf32>
    %13 = arith.addf %10, %12 : vector<8x128xf32>
    %cst_10 = arith.constant 0.000000e+00 : f32
    %14 = vector.broadcast %cst_10 : f32 to vector<8x128xf32>
    %15 = arith.maximumf %13, %14 : vector<8x128xf32>
    %16 = arith.truncf %15 : vector<8x128xf32> to vector<8x128xbf16>
    %c0_11 = arith.constant 0 : index
    %c0_12 = arith.constant 0 : index
    %17 = vector.load %arg6[%c0_11, %c0_12] : memref<128x128xbf16, #tpu.memory_space<vmem>>, vector<128x128xbf16>
    %cst_13 = arith.constant dense<0.000000e+00> : vector<8x128xf32>
    %18 = tpu.matmul %16, %17, %cst_13 {dimension_numbers = #tpu.dot_dimension_numbers<[1], [0], [0], [1], [0, 0, 1, 1], [], []>} : vector<8x128xbf16>, vector<128x128xbf16>, vector<8x128xf32> -> vector<8x128xf32>
    %c0_14 = arith.constant 0 : index
    %c0_15 = arith.constant 0 : index
    %19 = vector.load %arg7[%c0_14, %c0_15] : memref<1x128xf32, #tpu.memory_space<vmem>>, vector<1x128xf32>
    %20 = vector.broadcast %19 : vector<1x128xf32> to vector<8x128xf32>
    %21 = arith.addf %18, %20 : vector<8x128xf32>
    %c0_16 = arith.constant 0 : index
    %c0_17 = arith.constant 0 : index
    %22 = vector.load %arg8[%c0_16, %c0_17] : memref<8x128xf32, #tpu.memory_space<vmem>>, vector<8x128xf32>
    tpu.vector_store %arg8[%c0_16, %c0_17], %21 {strides = array<i32>} : memref<8x128xf32, #tpu.memory_space<vmem>>, vector<8x128xf32>,
    return
  }
  func.func @transform_0(%arg0: i32) -> (i32, i32) {
    %c0_i32 = arith.constant 0 : i32
    %c0_i32_0 = arith.constant 0 : i32
    return %arg0, %c0_i32 : i32, i32
  }
  func.func @transform_1(%arg0: i32) -> (i32, i32) {
    %c0_i32 = arith.constant 0 : i32
    %c0_i32_0 = arith.constant 0 : i32
    %c0_i32_1 = arith.constant 0 : i32
    return %c0_i32, %c0_i32_0 : i32, i32
  }
  func.func @transform_2(%arg0: i32) -> (i32, i32) {
    %c0_i32 = arith.constant 0 : i32
    %c0_i32_0 = arith.constant 0 : i32
    %c0_i32_1 = arith.constant 0 : i32
    return %c0_i32, %c0_i32_0 : i32, i32
  }
  func.func @transform_3(%arg0: i32) -> (i32, i32) {
    %c0_i32 = arith.constant 0 : i32
    %c0_i32_0 = arith.constant 0 : i32
    %c0_i32_1 = arith.constant 0 : i32
    return %c0_i32, %c0_i32_0 : i32, i32
  }
  func.func @transform_4(%arg0: i32) -> (i32, i32) {
    %c0_i32 = arith.constant 0 : i32
    %c0_i32_0 = arith.constant 0 : i32
    %c0_i32_1 = arith.constant 0 : i32
    return %c0_i32, %c0_i32_0 : i32, i32
  }
  func.func @transform_5(%arg0: i32) -> (i32, i32) {
    %c0_i32 = arith.constant 0 : i32
    %c0_i32_0 = arith.constant 0 : i32
    %c0_i32_1 = arith.constant 0 : i32
    return %c0_i32, %c0_i32_0 : i32, i32
  }
  func.func @transform_6(%arg0: i32) -> (i32, i32) {
    %c0_i32 = arith.constant 0 : i32
    %c0_i32_0 = arith.constant 0 : i32
    %c0_i32_1 = arith.constant 0 : i32
    return %c0_i32, %c0_i32_0 : i32, i32
  }
  func.func @transform_7(%arg0: i32) -> (i32, i32) {
    %c0_i32 = arith.constant 0 : i32
    %c0_i32_0 = arith.constant 0 : i32
    return %arg0, %c0_i32 : i32, i32
  }
}

</mosaic_0001>

<bundles_post_ra>
// kernel: tpu_custom_call.1
= control target key start
LH: loop header
LB: loop body
LE: loop exit
PB: predicated region body
PF: predicated region fallthrough
CT: control target
= control target key end

     0   :  { %12 = vsyncpa [#allocation3], 0  ;;  %s862_s0 = inlined_call_operand.hbm [shape: f32[8,128], index: 0, kind: input, shape index: {}]   ;;  %s863_s1 = inlined_call_operand.hbm [shape: bf16[128,128], index: 1, kind: input, shape index: {}]   ;;  %s864_s2 = inlined_call_operand.vmem [shape: f32[1,128], index: 2, kind: input, shape index: {}]   ;;  %s865_s3 = inlined_call_operand.hbm [shape: bf16[128,128], index: 3, kind: input, shape index: {}]   ;;  %s866_s4 = inlined_call_operand.vmem [shape: f32[1,128], index: 4, kind: input, shape index: {}]   ;;  %s867_s5 = inlined_call_operand.hbm [shape: bf16[128,128], index: 5, kind: input, shape index: {}]   ;;  %s868_s6 = inlined_call_operand.vmem [shape: f32[1,128], index: 6, kind: input, shape index: {}]   ;;  %s869_s7 = inlined_call_operand.hbm [shape: f32[8,128], index: 7, kind: output, shape index: {}]  }
   0x1   :  { %13 = vsyncpa [#allocation6], 0 }
   0x2   :  { %14 = vsyncpa [#allocation9], 0 }
   0x3   :  { %15 = vsyncpa [#allocation4], 0  ;;  %s705_s24 = smov [#allocation5]   ;;  %s587_s28 = scalar_lea.hbm %s863_s1, 1024 }
   0x4   :  { %s31_s25 = sshll.u32 %s705_s24, 4  ;;  %p588_p0 = scmp.ne.s32.totalorder %s863_s1, %s587_s28  ;;  %s32_s25 = int_to_ptr.vmem [resolvable:$true] %s31_s25 }
   0x5   :  { %p591_p1 = scmp.lt.u32.totalorder %s587_s28, %s863_s1 }
   0x7   :  { %p593_p2 = pnand %p591_p1, %p588_p0 }
   0x9   :  { %596 = shalt.err (!%p593_p2)
}
   0xa   :  { %s597_s10 = scalar_lea.vmem %s32_s25, 1024  ;;  %p602_p4 = scmp.lt.s32.totalorder %s32_s25, %s32_s25 }
   0xb   :  { %p598_p3 = scmp.ne.s32.totalorder %s32_s25, %s597_s10  ;;  %p603_p5 = scmp.lt.s32.totalorder %s597_s10, %s597_s10 }
   0xd   :  { %p604_p6 = por %p603_p5, %p602_p4 }
   0xf   :  { %p605_p7 = pnand %p604_p6, %p598_p3 }
  0x11   :  { %608 = shalt.err (!%p605_p7)
}
  0x12   :  { %s706_s11 = smov 64   ;;  %s707_s12 = smov 4  }
  0x13   :  { %37 = dma.hbm_to_vmem [thread:$0]  %s863_s1, 1024, %s32_s25, [#allocation6], %s706_s11, %s706_s11, %s707_s12  }
  0x14   :  { %s708_s15 = smov [#allocation2]   ;;  %s709_s17 = smov [#allocation7]  }
  0x15   :  { %s22_s16 = sshll.u32 %s708_s15, 4  ;;  %s45_s18 = sshll.u32 %s709_s17, 4  ;;  %s23_s16 = int_to_ptr.vmem [resolvable:$true] %s22_s16  ;;  %s46_s18 = int_to_ptr.vmem [resolvable:$true] %s45_s18 }
  0x16   :  { %s609_s21 = scalar_lea.hbm %s862_s0, 128 }
  0x17   :  { %p610_p8 = scmp.ne.s32.totalorder %s862_s0, %s609_s21  ;;  %p613_p9 = scmp.lt.u32.totalorder %s609_s21, %s862_s0 }
  0x19   :  { %p615_p10 = pnand %p613_p9, %p610_p8 }
  0x1b   :  { %618 = shalt.err (!%p615_p10)
}
  0x1c   :  { %s619_s1 = scalar_lea.vmem %s23_s16, 128  ;;  %p624_p12 = scmp.lt.s32.totalorder %s23_s16, %s23_s16 }
  0x1d   :  { %p620_p11 = scmp.ne.s32.totalorder %s23_s16, %s619_s1  ;;  %p625_p13 = scmp.lt.s32.totalorder %s619_s1, %s619_s1 }
  0x1f   :  { %p626_p0 = por %p625_p13, %p624_p12 }
  0x21   :  { %p627_p1 = pnand %p626_p0, %p620_p11 }
  0x23   :  { %630 = shalt.err (!%p627_p1)
}
  0x24   :  { %25 = dma.hbm_to_vmem [thread:$0]  %s862_s0, 128, %s23_s16, [#allocation3]  }
  0x25   :  { %s631_s30 = scalar_lea.hbm %s865_s3, 1024 }
  0x26   :  { %p632_p2 = scmp.ne.s32.totalorder %s865_s3, %s631_s30  ;;  %p635_p3 = scmp.lt.u32.totalorder %s631_s30, %s865_s3 }
  0x28   :  { %p637_p4 = pnand %p635_p3, %p632_p2 }
  0x2a   :  { %640 = shalt.err (!%p637_p4)
}
  0x2b   :  { %s641_s14 = scalar_lea.vmem %s46_s18, 1024  ;;  %p646_p6 = scmp.lt.s32.totalorder %s46_s18, %s46_s18 }
  0x2c   :  { %p642_p5 = scmp.ne.s32.totalorder %s46_s18, %s641_s14  ;;  %p647_p7 = scmp.lt.s32.totalorder %s641_s14, %s641_s14 }
  0x2e   :  { %p648_p8 = por %p647_p7, %p646_p6 }
  0x30   :  { %p649_p9 = pnand %p648_p8, %p642_p5 }
  0x32   :  { %652 = shalt.err (!%p649_p9)
}
  0x33   :  { %51 = dma.hbm_to_vmem [thread:$0]  %s865_s3, 1024, %s46_s18, [#allocation6], %s706_s11, %s706_s11, %s707_s12  }
  0x34   :  { %s710_s16 = smov [#allocation8]   ;;  %s653_s21 = scalar_lea.hbm %s867_s5, 1024 }
  0x35   :  { %s59_s17 = sshll.u32 %s710_s16, 4  ;;  %p654_p10 = scmp.ne.s32.totalorder %s867_s5, %s653_s21  ;;  %s60_s17 = int_to_ptr.vmem [resolvable:$true] %s59_s17 }
  0x36   :  { %p657_p11 = scmp.lt.u32.totalorder %s653_s21, %s867_s5 }
  0x38   :  { %p659_p12 = pnand %p657_p11, %p654_p10 }
  0x3a   :  { %662 = shalt.err (!%p659_p12)
}
  0x3b   :  { %s663_s1 = scalar_lea.vmem %s60_s17, 1024  ;;  %p668_p0 = scmp.lt.s32.totalorder %s60_s17, %s60_s17 }
  0x3c   :  { %p664_p13 = scmp.ne.s32.totalorder %s60_s17, %s663_s1  ;;  %p669_p1 = scmp.lt.s32.totalorder %s663_s1, %s663_s1 }
  0x3e   :  { %p670_p2 = por %p669_p1, %p668_p0 }
  0x40   :  { %p671_p3 = pnand %p670_p2, %p664_p13 }
  0x42   :  { %674 = shalt.err (!%p671_p3)
}
  0x43   :  { %65 = dma.hbm_to_vmem [thread:$0]  %s867_s5, 1024, %s60_s17, [#allocation9], %s706_s11, %s706_s11, %s707_s12  }
  0x44   :  { %697 = dma.done.wait [#allocation3], 128  }
  0x45   :  { %698 = vsyncadd [#allocation3], 4294967168 }
  0x46   :  { %699 = dma.done.wait [#allocation6], 2048  }
  0x47   :  { %700 = vsyncadd [#allocation6], 4294965248 }
  0x48   :  { %701 = dma.done.wait [#allocation9], 1024  }
  0x49   :  { %702 = vsyncadd [#allocation9], 4294966272  ;;  %v711_v0 = vmov 0.0   ;;  %vm712_vm0 = vmmov 0   ;;  %v561_v1 = vld [vmem:[#allocation5] sm:$0xff]   ;;  %v562_v2 = vld [vmem:[#allocation5 + $0x8] sm:$0xff]  }
  0x4a   :  { %492 = vmatprep.subr.bf16.mxu0 %v711_v0  ;;  %508 = vmatprep.mubr.msk.bf16.mxu0 %vm712_vm0, %v711_v0  ;;  %v563_v3 = vld [vmem:[#allocation5 + $0x10] sm:$0xff]   ;;  %v569_v4 = vld [vmem:[#allocation7] sm:$0xff]   ;;  %v564_v5 = vld [vmem:[#allocation5 + $0x18] sm:$0xff]   ;;  %s713_s28 = smov [#allocation10]  }
  0x4b   :  { %512 = vmatprep.subr.bf16.mxu1 %v711_v0  ;;  %528 = vmatprep.mubr.msk.bf16.mxu1 %vm712_vm0, %v711_v0  ;;  %v570_v6 = vld [vmem:[#allocation7 + $0x8] sm:$0xff]   ;;  %v565_v7 = vld [vmem:[#allocation5 + $0x20] sm:$0xff]   ;;  %v571_v8 = vld [vmem:[#allocation7 + $0x10] sm:$0xff]   ;;  %s427_s29 = sshll.u32 %s713_s28, 4  ;;  %s428_s29 = int_to_ptr.vmem [resolvable:$true] %s427_s29 }
  0x4c   :  { %493 = vmatpush3.bf16.msra.mxu0 %v561_v1  ;;  %513 = vmatpush3.bf16.msra.mxu1 %v569_v4  ;;  %v566_v9 = vld [vmem:[#allocation5 + $0x28] sm:$0xff]   ;;  %v572_v10 = vld [vmem:[#allocation7 + $0x18] sm:$0xff]   ;;  %v567_v11 = vld [vmem:[#allocation5 + $0x30] sm:$0xff]   ;;  %p680_p5 = scmp.lt.s32.totalorder %s428_s29, %s428_s29 }
  0x4d   :  { %494 = vmatprep.subr.bf16.mxu0 %v711_v0  ;;  %514 = vmatprep.subr.bf16.mxu1 %v711_v0  ;;  %v568_v12 = vld [vmem:[#allocation5 + $0x38] sm:$0xff]   ;;  %v573_v15 = vld [vmem:[#allocation7 + $0x20] sm:$0xff]   ;;  %v574_v16 = vld [vmem:[#allocation7 + $0x28] sm:$0xff]  }
  0x4e   :  { %v81_v13 = vld [vmem:[#allocation2] sm:$0xff]  ;;  %v575_v17 = vld [vmem:[#allocation7 + $0x30] sm:$0xff]   ;;  %v577_v19 = vld [vmem:[#allocation8] sm:$0xff]  }
  0x4f   :  { %v82_v14 = vpack.c.bf16 %v81_v13, %v81_v13  ;;  %v576_v18 = vld [vmem:[#allocation7 + $0x38] sm:$0xff]   ;;  %v578_v20 = vld [vmem:[#allocation8 + $0x8] sm:$0xff]   ;;  %v579_v21 = vld [vmem:[#allocation8 + $0x10] sm:$0xff]  }
  0x50   :  { %495 = vmatpush3.bf16.msra.mxu0 %v562_v2  ;;  %515 = vmatpush3.bf16.msra.mxu1 %v570_v6  ;;  %v580_v22 = vld [vmem:[#allocation8 + $0x18] sm:$0xff]   ;;  %v581_v23 = vld [vmem:[#allocation8 + $0x20] sm:$0xff]   ;;  %v582_v24 = vld [vmem:[#allocation8 + $0x28] sm:$0xff]  }
  0x51   :  { %496 = vmatprep.subr.bf16.mxu0 %v711_v0  ;;  %516 = vmatprep.subr.bf16.mxu1 %v711_v0  ;;  %v438_v25 = vld [vmem:[%s864_s2] ss:$0 sm:$0xff]  ;;  %v583_v33 = vld [vmem:[#allocation8 + $0x30] sm:$0xff]  }
  0x52   :  { %v584_v34 = vld [vmem:[#allocation8 + $0x38] sm:$0xff]  }
  0x53   :  { %v447_v35 = vld [vmem:[%s866_s4] ss:$0 sm:$0xff]  ;;  %s675_s4 = scalar_lea.vmem %s428_s29, 128 }
  0x54   :  { %497 = vmatpush3.bf16.msra.mxu0 %v563_v3  ;;  %517 = vmatpush3.bf16.msra.mxu1 %v571_v8  ;;  %v456_v43 = vld [vmem:[%s868_s6] ss:$0 sm:$0xff]  ;;  %p676_p4 = scmp.ne.s32.totalorder %s428_s29, %s675_s4  ;;  %p681_p6 = scmp.lt.s32.totalorder %s675_s4, %s675_s4 }
  0x55   :  { %498 = vmatprep.subr.bf16.mxu0 %v711_v0  ;;  %518 = vmatprep.subr.bf16.mxu1 %v711_v0 }
  0x56   :  { %p682_p7 = por %p681_p6, %p680_p5 }
  0x58   :  { %499 = vmatpush3.bf16.msra.mxu0 %v564_v5  ;;  %519 = vmatpush3.bf16.msra.mxu1 %v572_v10  ;;  %p683_p8 = pnand %p682_p7, %p676_p4 }
  0x59   :  { %500 = vmatprep.subr.bf16.mxu0 %v711_v0  ;;  %520 = vmatprep.subr.bf16.mxu1 %v711_v0 }
  0x5c   :  { %501 = vmatpush3.bf16.msra.mxu0 %v565_v7  ;;  %521 = vmatpush3.bf16.msra.mxu1 %v573_v15 }
  0x5d   :  { %502 = vmatprep.subr.bf16.mxu0 %v711_v0  ;;  %522 = vmatprep.subr.bf16.mxu1 %v711_v0 }
  0x60   :  { %503 = vmatpush3.bf16.msra.mxu0 %v566_v9  ;;  %523 = vmatpush3.bf16.msra.mxu1 %v574_v16 }
  0x61   :  { %504 = vmatprep.subr.bf16.mxu0 %v711_v0  ;;  %524 = vmatprep.subr.bf16.mxu1 %v711_v0 }
  0x64   :  { %505 = vmatpush3.bf16.msra.mxu0 %v567_v11  ;;  %525 = vmatpush3.bf16.msra.mxu1 %v575_v17 }
  0x65   :  { %506 = vmatprep.subr.bf16.mxu0 %v711_v0  ;;  %526 = vmatprep.subr.bf16.mxu1 %v711_v0 }
  0x68   :  { %507 = vmatpush3.bf16.msra.mxu0 %v568_v12  ;;  %527 = vmatpush3.bf16.msra.mxu1 %v576_v18 }
  0x69   :  { %532 = vmatprep.subr.bf16.mxu0 %v711_v0 }
  0x6b   :  { %509 = vmatmul.mubr.bf16.vlgmr.msra.gmra.mrb[0].mxu0 %v82_v14 }
  0x6c   :  { %548 = vmatprep.mubr.msk.bf16.mxu0 %vm712_vm0, %v711_v0  ;;  %533 = vmatpush3.bf16.msra.mxu0 %v577_v19 }
  0x6d   :  { %534 = vmatprep.subr.bf16.mxu0 %v711_v0 }
  0x70   :  { %535 = vmatpush3.bf16.msra.mxu0 %v578_v20 }
  0x71   :  { %536 = vmatprep.subr.bf16.mxu0 %v711_v0 }
  0x74   :  { %537 = vmatpush3.bf16.msra.mxu0 %v579_v21 }
  0x75   :  { %538 = vmatprep.subr.bf16.mxu0 %v711_v0 }
  0x78   :  { %539 = vmatpush3.bf16.msra.mxu0 %v580_v22 }
  0x79   :  { %540 = vmatprep.subr.bf16.mxu0 %v711_v0 }
  0x7c   :  { %541 = vmatpush3.bf16.msra.mxu0 %v581_v23 }
  0x7d   :  { %542 = vmatprep.subr.bf16.mxu0 %v711_v0 }
  0x80   :  { %543 = vmatpush3.bf16.msra.mxu0 %v582_v24 }
  0x81   :  { %544 = vmatprep.subr.bf16.mxu0 %v711_v0 }
  0x84   :  { %545 = vmatpush3.bf16.msra.mxu0 %v583_v33 }
  0x85   :  { %546 = vmatprep.subr.bf16.mxu0 %v711_v0 }
  0x88   :  { %547 = vmatpush3.bf16.msra.mxu0 %v584_v34 }
 0x13e   :  { %v188_v26 = vpop.f32.mrb[0].mxu0 }
 0x13f   :  { %v189_v27 = vadd.f32 %v438_v25, %v188_v26  ;;  %v510_v28 = vpop.f32.mrb[1].mxu0 }
 0x140   :  { %v191_v29 = vpop.f32.mrb[2].mxu0 }
 0x141   :  { %585 = vtanh.f32 %v189_v27  ;;  %v511_v30 = vpop.f32.mrb[3].mxu0 }
 0x14b   :  { %v586_v31 = vpop.eup %585 }
 0x14c   :  { %v195_v32 = vpack.c.bf16 %v586_v31, %v586_v31 }
 0x14e   :  { %529 = vmatmul.mubr.bf16.vlgmr.msra.gmra.mrb[0].mxu1 %v195_v32 }
 0x221   :  { %v301_v36 = vpop.f32.mrb[0].mxu1 }
 0x222   :  { %v302_v37 = vadd.f32 %v447_v35, %v301_v36  ;;  %v530_v38 = vpop.f32.mrb[1].mxu1 }
 0x223   :  { %v304_v39 = vpop.f32.mrb[2].mxu1 }
 0x224   :  { %v307_v40 = vmax.f32 %v302_v37, 0.0  ;;  %v531_v41 = vpop.f32.mrb[3].mxu1 }
 0x226   :  { %v308_v42 = vpack.c.bf16 %v307_v40, %v307_v40 }
 0x228   :  { %549 = vmatmul.mubr.bf16.vlgmr.msra.gmra.mrb[4].mxu0 %v308_v42 }
 0x2fb   :  { %v414_v44 = vpop.f32.mrb[4].mxu0 }
 0x2fc   :  { %v415_v45 = vadd.f32 %v456_v43, %v414_v44  ;;  %v550_v46 = vpop.f32.mrb[5].mxu0 }
 0x2fd   :  { %v417_v47 = vpop.f32.mrb[6].mxu0 }
 0x2fe   :  { %420 = vst [vmem:[#allocation10] sm:$0xff] %v415_v45  ;;  %v551_v48 = vpop.f32.mrb[7].mxu0 }
 0x2ff   :  { %686 = shalt.err (!%p683_p8)
}
 0x300   :  { %s687_s6 = scalar_lea.hbm %s869_s7, 128 }
 0x301   :  { %p688_p9 = scmp.ne.s32.totalorder %s869_s7, %s687_s6  ;;  %p691_p10 = scmp.lt.u32.totalorder %s687_s6, %s869_s7 }
 0x303   :  { %p693_p11 = pnand %p691_p10, %p688_p9 }
 0x305   :  { %696 = shalt.err (!%p693_p11)
}
 0x306   :  { %430 = dma.vmem_to_hbm [thread:$0]  %s428_s29, 128, %s869_s7, [#allocation4]  }
 0x307   :  { %703 = dma.done.wait [#allocation4], 128  }
 0x308   :  { %704 = vsyncadd [#allocation4], 4294967168 }
 0x309   :  { %434 = vsyncpa [#allocation3], 1 }
 0x30a   :  { %435 = vsyncpa [#allocation6], 1 }
 0x30b   :  { %436 = vsyncpa [#allocation9], 1 }
 0x30c   :  { %437 = vsyncpa [#allocation4], 1 }

// kernel: tpu_custom_call.1
= control target key start
LH: loop header
LB: loop body
LE: loop exit
PB: predicated region body
PF: predicated region fallthrough
CT: control target
= control target key end

     0   :  { %12 = vsyncpa [#allocation3], 0  ;;  %s862_s0 = inlined_call_operand.hbm [shape: f32[8,128], index: 0, kind: input, shape index: {}]   ;;  %s863_s1 = inlined_call_operand.hbm [shape: bf16[128,128], index: 1, kind: input, shape index: {}]   ;;  %s864_s2 = inlined_call_operand.vmem [shape: f32[1,128], index: 2, kind: input, shape index: {}]   ;;  %s865_s3 = inlined_call_operand.hbm [shape: bf16[128,128], index: 3, kind: input, shape index: {}]   ;;  %s866_s4 = inlined_call_operand.vmem [shape: f32[1,128], index: 4, kind: input, shape index: {}]   ;;  %s867_s5 = inlined_call_operand.hbm [shape: bf16[128,128], index: 5, kind: input, shape index: {}]   ;;  %s868_s6 = inlined_call_operand.vmem [shape: f32[1,128], index: 6, kind: input, shape index: {}]   ;;  %s869_s7 = inlined_call_operand.hbm [shape: f32[8,128], index: 7, kind: output, shape index: {}]  }
   0x1   :  { %13 = vsyncpa [#allocation6], 0 }
   0x2   :  { %14 = vsyncpa [#allocation9], 0 }
   0x3   :  { %15 = vsyncpa [#allocation4], 0  ;;  %s705_s24 = smov [#allocation5]   ;;  %s587_s28 = scalar_lea.hbm %s863_s1, 1024 }
   0x4   :  { %s31_s25 = sshll.u32 %s705_s24, 4  ;;  %p588_p0 = scmp.ne.s32.totalorder %s863_s1, %s587_s28  ;;  %s32_s25 = int_to_ptr.vmem [resolvable:$true] %s31_s25 }
   0x5   :  { %p591_p1 = scmp.lt.u32.totalorder %s587_s28, %s863_s1 }
   0x7   :  { %p593_p2 = pnand %p591_p1, %p588_p0 }
   0x9   :  { %596 = shalt.err (!%p593_p2)
}
   0xa   :  { %s597_s10 = scalar_lea.vmem %s32_s25, 1024  ;;  %p602_p4 = scmp.lt.s32.totalorder %s32_s25, %s32_s25 }
   0xb   :  { %p598_p3 = scmp.ne.s32.totalorder %s32_s25, %s597_s10  ;;  %p603_p5 = scmp.lt.s32.totalorder %s597_s10, %s597_s10 }
   0xd   :  { %p604_p6 = por %p603_p5, %p602_p4 }
   0xf   :  { %p605_p7 = pnand %p604_p6, %p598_p3 }
  0x11   :  { %608 = shalt.err (!%p605_p7)
}
  0x12   :  { %s706_s11 = smov 64   ;;  %s707_s12 = smov 4  }
  0x13   :  { %37 = dma.hbm_to_vmem [thread:$0]  %s863_s1, 1024, %s32_s25, [#allocation6], %s706_s11, %s706_s11, %s707_s12  }
  0x14   :  { %s708_s15 = smov [#allocation2]   ;;  %s709_s17 = smov [#allocation7]  }
  0x15   :  { %s22_s16 = sshll.u32 %s708_s15, 4  ;;  %s45_s18 = sshll.u32 %s709_s17, 4  ;;  %s23_s16 = int_to_ptr.vmem [resolvable:$true] %s22_s16  ;;  %s46_s18 = int_to_ptr.vmem [resolvable:$true] %s45_s18 }
  0x16   :  { %s609_s21 = scalar_lea.hbm %s862_s0, 128 }
  0x17   :  { %p610_p8 = scmp.ne.s32.totalorder %s862_s0, %s609_s21  ;;  %p613_p9 = scmp.lt.u32.totalorder %s609_s21, %s862_s0 }
  0x19   :  { %p615_p10 = pnand %p613_p9, %p610_p8 }
  0x1b   :  { %618 = shalt.err (!%p615_p10)
}
  0x1c   :  { %s619_s1 = scalar_lea.vmem %s23_s16, 128  ;;  %p624_p12 = scmp.lt.s32.totalorder %s23_s16, %s23_s16 }
  0x1d   :  { %p620_p11 = scmp.ne.s32.totalorder %s23_s16, %s619_s1  ;;  %p625_p13 = scmp.lt.s32.totalorder %s619_s1, %s619_s1 }
  0x1f   :  { %p626_p0 = por %p625_p13, %p624_p12 }
  0x21   :  { %p627_p1 = pnand %p626_p0, %p620_p11 }
  0x23   :  { %630 = shalt.err (!%p627_p1)
}
  0x24   :  { %25 = dma.hbm_to_vmem [thread:$0]  %s862_s0, 128, %s23_s16, [#allocation3]  }
  0x25   :  { %s631_s30 = scalar_lea.hbm %s865_s3, 1024 }
  0x26   :  { %p632_p2 = scmp.ne.s32.totalorder %s865_s3, %s631_s30  ;;  %p635_p3 = scmp.lt.u32.totalorder %s631_s30, %s865_s3 }
  0x28   :  { %p637_p4 = pnand %p635_p3, %p632_p2 }
  0x2a   :  { %640 = shalt.err (!%p637_p4)
}
  0x2b   :  { %s641_s14 = scalar_lea.vmem %s46_s18, 1024  ;;  %p646_p6 = scmp.lt.s32.totalorder %s46_s18, %s46_s18 }
  0x2c   :  { %p642_p5 = scmp.ne.s32.totalorder %s46_s18, %s641_s14  ;;  %p647_p7 = scmp.lt.s32.totalorder %s641_s14, %s641_s14 }
  0x2e   :  { %p648_p8 = por %p647_p7, %p646_p6 }
  0x30   :  { %p649_p9 = pnand %p648_p8, %p642_p5 }
  0x32   :  { %652 = shalt.err (!%p649_p9)
}
  0x33   :  { %51 = dma.hbm_to_vmem [thread:$0]  %s865_s3, 1024, %s46_s18, [#allocation6], %s706_s11, %s706_s11, %s707_s12  }
  0x34   :  { %s710_s16 = smov [#allocation8]   ;;  %s653_s21 = scalar_lea.hbm %s867_s5, 1024 }
  0x35   :  { %s59_s17 = sshll.u32 %s710_s16, 4  ;;  %p654_p10 = scmp.ne.s32.totalorder %s867_s5, %s653_s21  ;;  %s60_s17 = int_to_ptr.vmem [resolvable:$true] %s59_s17 }
  0x36   :  { %p657_p11 = scmp.lt.u32.totalorder %s653_s21, %s867_s5 }
  0x38   :  { %p659_p12 = pnand %p657_p11, %p654_p10 }
  0x3a   :  { %662 = shalt.err (!%p659_p12)
}
  0x3b   :  { %s663_s1 = scalar_lea.vmem %s60_s17, 1024  ;;  %p668_p0 = scmp.lt.s32.totalorder %s60_s17, %s60_s17 }
  0x3c   :  { %p664_p13 = scmp.ne.s32.totalorder %s60_s17, %s663_s1  ;;  %p669_p1 = scmp.lt.s32.totalorder %s663_s1, %s663_s1 }
  0x3e   :  { %p670_p2 = por %p669_p1, %p668_p0 }
  0x40   :  { %p671_p3 = pnand %p670_p2, %p664_p13 }
  0x42   :  { %674 = shalt.err (!%p671_p3)
}
  0x43   :  { %65 = dma.hbm_to_vmem [thread:$0]  %s867_s5, 1024, %s60_s17, [#allocation9], %s706_s11, %s706_s11, %s707_s12  }
  0x44   :  { %697 = dma.done.wait [#allocation3], 128  }
  0x45   :  { %698 = vsyncadd [#allocation3], 4294967168 }
  0x46   :  { %699 = dma.done.wait [#allocation6], 2048  }
  0x47   :  { %700 = vsyncadd [#allocation6], 4294965248 }
  0x48   :  { %701 = dma.done.wait [#allocation9], 1024  }
  0x49   :  { %702 = vsyncadd [#allocation9], 4294966272  ;;  %v711_v0 = vmov 0.0   ;;  %vm712_vm0 = vmmov 0   ;;  %v561_v1 = vld [vmem:[#allocation5] sm:$0xff]   ;;  %v562_v2 = vld [vmem:[#allocation5 + $0x8] sm:$0xff]  }
  0x4a   :  { %492 = vmatprep.subr.bf16.mxu0 %v711_v0  ;;  %508 = vmatprep.mubr.msk.bf16.mxu0 %vm712_vm0, %v711_v0  ;;  %v563_v3 = vld [vmem:[#allocation5 + $0x10] sm:$0xff]   ;;  %v569_v4 = vld [vmem:[#allocation7] sm:$0xff]   ;;  %v564_v5 = vld [vmem:[#allocation5 + $0x18] sm:$0xff]   ;;  %s713_s28 = smov [#allocation10]  }
  0x4b   :  { %512 = vmatprep.subr.bf16.mxu1 %v711_v0  ;;  %528 = vmatprep.mubr.msk.bf16.mxu1 %vm712_vm0, %v711_v0  ;;  %v570_v6 = vld [vmem:[#allocation7 + $0x8] sm:$0xff]   ;;  %v565_v7 = vld [vmem:[#allocation5 + $0x20] sm:$0xff]   ;;  %v571_v8 = vld [vmem:[#allocation7 + $0x10] sm:$0xff]   ;;  %s427_s29 = sshll.u32 %s713_s28, 4  ;;  %s428_s29 = int_to_ptr.vmem [resolvable:$true] %s427_s29 }
  0x4c   :  { %493 = vmatpush3.bf16.msra.mxu0 %v561_v1  ;;  %513 = vmatpush3.bf16.msra.mxu1 %v569_v4  ;;  %v566_v9 = vld [vmem:[#allocation5 + $0x28] sm:$0xff]   ;;  %v572_v10 = vld [vmem:[#allocation7 + $0x18] sm:$0xff]   ;;  %v567_v11 = vld [vmem:[#allocation5 + $0x30] sm:$0xff]   ;;  %p680_p5 = scmp.lt.s32.totalorder %s428_s29, %s428_s29 }
  0x4d   :  { %494 = vmatprep.subr.bf16.mxu0 %v711_v0  ;;  %514 = vmatprep.subr.bf16.mxu1 %v711_v0  ;;  %v568_v12 = vld [vmem:[#allocation5 + $0x38] sm:$0xff]   ;;  %v573_v15 = vld [vmem:[#allocation7 + $0x20] sm:$0xff]   ;;  %v574_v16 = vld [vmem:[#allocation7 + $0x28] sm:$0xff]  }
  0x4e   :  { %v81_v13 = vld [vmem:[#allocation2] sm:$0xff]  ;;  %v575_v17 = vld [vmem:[#allocation7 + $0x30] sm:$0xff]   ;;  %v577_v19 = vld [vmem:[#allocation8] sm:$0xff]  }
  0x4f   :  { %v82_v14 = vpack.c.bf16 %v81_v13, %v81_v13  ;;  %v576_v18 = vld [vmem:[#allocation7 + $0x38] sm:$0xff]   ;;  %v578_v20 = vld [vmem:[#allocation8 + $0x8] sm:$0xff]   ;;  %v579_v21 = vld [vmem:[#allocation8 + $0x10] sm:$0xff]  }
  0x50   :  { %495 = vmatpush3.bf16.msra.mxu0 %v562_v2  ;;  %515 = vmatpush3.bf16.msra.mxu1 %v570_v6  ;;  %v580_v22 = vld [vmem:[#allocation8 + $0x18] sm:$0xff]   ;;  %v581_v23 = vld [vmem:[#allocation8 + $0x20] sm:$0xff]   ;;  %v582_v24 = vld [vmem:[#allocation8 + $0x28] sm:$0xff]  }
  0x51   :  { %496 = vmatprep.subr.bf16.mxu0 %v711_v0  ;;  %516 = vmatprep.subr.bf16.mxu1 %v711_v0  ;;  %v438_v25 = vld [vmem:[%s864_s2] ss:$0 sm:$0xff]  ;;  %v583_v33 = vld [vmem:[#allocation8 + $0x30] sm:$0xff]  }
  0x52   :  { %v584_v34 = vld [vmem:[#allocation8 + $0x38] sm:$0xff]  }
  0x53   :  { %v447_v35 = vld [vmem:[%s866_s4] ss:$0 sm:$0xff]  ;;  %s675_s4 = scalar_lea.vmem %s428_s29, 128 }
  0x54   :  { %497 = vmatpush3.bf16.msra.mxu0 %v563_v3  ;;  %517 = vmatpush3.bf16.msra.mxu1 %v571_v8  ;;  %v456_v43 = vld [vmem:[%s868_s6] ss:$0 sm:$0xff]  ;;  %p676_p4 = scmp.ne.s32.totalorder %s428_s29, %s675_s4  ;;  %p681_p6 = scmp.lt.s32.totalorder %s675_s4, %s675_s4 }
  0x55   :  { %498 = vmatprep.subr.bf16.mxu0 %v711_v0  ;;  %518 = vmatprep.subr.bf16.mxu1 %v711_v0 }
  0x56   :  { %p682_p7 = por %p681_p6, %p680_p5 }
  0x58   :  { %499 = vmatpush3.bf16.msra.mxu0 %v564_v5  ;;  %519 = vmatpush3.bf16.msra.mxu1 %v572_v10  ;;  %p683_p8 = pnand %p682_p7, %p676_p4 }
  0x59   :  { %500 = vmatprep.subr.bf16.mxu0 %v711_v0  ;;  %520 = vmatprep.subr.bf16.mxu1 %v711_v0 }
  0x5c   :  { %501 = vmatpush3.bf16.msra.mxu0 %v565_v7  ;;  %521 = vmatpush3.bf16.msra.mxu1 %v573_v15 }
  0x5d   :  { %502 = vmatprep.subr.bf16.mxu0 %v711_v0  ;;  %522 = vmatprep.subr.bf16.mxu1 %v711_v0 }
  0x60   :  { %503 = vmatpush3.bf16.msra.mxu0 %v566_v9  ;;  %523 = vmatpush3.bf16.msra.mxu1 %v574_v16 }
  0x61   :  { %504 = vmatprep.subr.bf16.mxu0 %v711_v0  ;;  %524 = vmatprep.subr.bf16.mxu1 %v711_v0 }
  0x64   :  { %505 = vmatpush3.bf16.msra.mxu0 %v567_v11  ;;  %525 = vmatpush3.bf16.msra.mxu1 %v575_v17 }
  0x65   :  { %506 = vmatprep.subr.bf16.mxu0 %v711_v0  ;;  %526 = vmatprep.subr.bf16.mxu1 %v711_v0 }
  0x68   :  { %507 = vmatpush3.bf16.msra.mxu0 %v568_v12  ;;  %527 = vmatpush3.bf16.msra.mxu1 %v576_v18 }
  0x69   :  { %532 = vmatprep.subr.bf16.mxu0 %v711_v0 }
  0x6b   :  { %509 = vmatmul.mubr.bf16.vlgmr.msra.gmra.mrb[0].mxu0 %v82_v14 }
  0x6c   :  { %548 = vmatprep.mubr.msk.bf16.mxu0 %vm712_vm0, %v711_v0  ;;  %533 = vmatpush3.bf16.msra.mxu0 %v577_v19 }
  0x6d   :  { %534 = vmatprep.subr.bf16.mxu0 %v711_v0 }
  0x70   :  { %535 = vmatpush3.bf16.msra.mxu0 %v578_v20 }
  0x71   :  { %536 = vmatprep.subr.bf16.mxu0 %v711_v0 }
  0x74   :  { %537 = vmatpush3.bf16.msra.mxu0 %v579_v21 }
  0x75   :  { %538 = vmatprep.subr.bf16.mxu0 %v711_v0 }
  0x78   :  { %539 = vmatpush3.bf16.msra.mxu0 %v580_v22 }
  0x79   :  { %540 = vmatprep.subr.bf16.mxu0 %v711_v0 }
  0x7c   :  { %541 = vmatpush3.bf16.msra.mxu0 %v581_v23 }
  0x7d   :  { %542 = vmatprep.subr.bf16.mxu0 %v711_v0 }
  0x80   :  { %543 = vmatpush3.bf16.msra.mxu0 %v582_v24 }
  0x81   :  { %544 = vmatprep.subr.bf16.mxu0 %v711_v0 }
  0x84   :  { %545 = vmatpush3.bf16.msra.mxu0 %v583_v33 }
  0x85   :  { %546 = vmatprep.subr.bf16.mxu0 %v711_v0 }
  0x88   :  { %547 = vmatpush3.bf16.msra.mxu0 %v584_v34 }
 0x13e   :  { %v188_v26 = vpop.f32.mrb[0].mxu0 }
 0x13f   :  { %v189_v27 = vadd.f32 %v438_v25, %v188_v26  ;;  %v510_v28 = vpop.f32.mrb[1].mxu0 }
 0x140   :  { %v191_v29 = vpop.f32.mrb[2].mxu0 }
 0x141   :  { %585 = vtanh.f32 %v189_v27  ;;  %v511_v30 = vpop.f32.mrb[3].mxu0 }
 0x14b   :  { %v586_v31 = vpop.eup %585 }
 0x14c   :  { %v195_v32 = vpack.c.bf16 %v586_v31, %v586_v31 }
 0x14e   :  { %529 = vmatmul.mubr.bf16.vlgmr.msra.gmra.mrb[0].mxu1 %v195_v32 }
 0x221   :  { %v301_v36 = vpop.f32.mrb[0].mxu1 }
 0x222   :  { %v302_v37 = vadd.f32 %v447_v35, %v301_v36  ;;  %v530_v38 = vpop.f32.mrb[1].mxu1 }
 0x223   :  { %v304_v39 = vpop.f32.mrb[2].mxu1 }
 0x224   :  { %v307_v40 = vmax.f32 %v302_v37, 0.0  ;;  %v531_v41 = vpop.f32.mrb[3].mxu1 }
 0x226   :  { %v308_v42 = vpack.c.bf16 %v307_v40, %v307_v40 }
 0x228   :  { %549 = vmatmul.mubr.bf16.vlgmr.msra.gmra.mrb[4].mxu0 %v308_v42 }
 0x2fb   :  { %v414_v44 = vpop.f32.mrb[4].mxu0 }
 0x2fc   :  { %v415_v45 = vadd.f32 %v456_v43, %v414_v44  ;;  %v550_v46 = vpop.f32.mrb[5].mxu0 }
 0x2fd   :  { %v417_v47 = vpop.f32.mrb[6].mxu0 }
 0x2fe   :  { %420 = vst [vmem:[#allocation10] sm:$0xff] %v415_v45  ;;  %v551_v48 = vpop.f32.mrb[7].mxu0 }
 0x2ff   :  { %686 = shalt.err (!%p683_p8)
}
 0x300   :  { %s687_s6 = scalar_lea.hbm %s869_s7, 128 }
 0x301   :  { %p688_p9 = scmp.ne.s32.totalorder %s869_s7, %s687_s6  ;;  %p691_p10 = scmp.lt.u32.totalorder %s687_s6, %s869_s7 }
 0x303   :  { %p693_p11 = pnand %p691_p10, %p688_p9 }
 0x305   :  { %696 = shalt.err (!%p693_p11)
}
 0x306   :  { %430 = dma.vmem_to_hbm [thread:$0]  %s428_s29, 128, %s869_s7, [#allocation4]  }
 0x307   :  { %703 = dma.done.wait [#allocation4], 128  }
 0x308   :  { %704 = vsyncadd [#allocation4], 4294967168 }
 0x309   :  { %434 = vsyncpa [#allocation3], 1 }
 0x30a   :  { %435 = vsyncpa [#allocation6], 1 }
 0x30b   :  { %436 = vsyncpa [#allocation9], 1 }
 0x30c   :  { %437 = vsyncpa [#allocation4], 1 }

</bundles_post_ra>
